<compile_context>
chip_gen: v5e
topology: v5e:2x2
jax: 0.10.0
libtpu: 0.0.40
codegen_flags: <defaults>
</compile_context>

<pallas_src>
import jax
import jax.numpy as jnp
from jax.experimental import pallas as pl
from jax.experimental.pallas import tpu as pltpu


def mlp_kernel(xt_ref, w1t_ref, b1_ref, w2_ref, b2_ref, o_ref):
    # xt:  (D, TB)   batch-on-lanes activation tile (f32 or bf16)
    # w1t: (H, D)    fc1 weight, PyTorch (out, in) layout -> MXU LHS
    # b1:  (H, 1)    fc1 bias (broadcasts over the lane/batch axis)
    # w2:  (H, 1)    fc2 weight column
    # b2:  (1, 1)    fc2 bias, SMEM scalar
    # o:   (1, TB)   lane-dense output tile
    xt = xt_ref[...]
    # fc1 on the MXU: (H, D) @ (D, TB) -> (32, TB), f32 accumulation, ReLU.
    h = jnp.dot(w1t_ref[...], xt, preferred_element_type=jnp.float32) + b1_ref[...]
    h = jnp.maximum(h, 0.0)
    # fc2 on the VPU/XLU: broadcast-mul by the (32, 1) weight column and reduce
    # over the 32-deep hidden (sublane) axis -> (1, TB).  Avoids an M=1/N=1 MXU
    # pass; exp/reciprocal of the sigmoid land on the EUP slot, lane-dense.
    z = jnp.sum(h * w2_ref[...], axis=0, keepdims=True) + b2_ref[0, 0]
    o_ref[...] = jax.nn.sigmoid(z).astype(o_ref.dtype)


def shallow_logistic_forward_xt(xt, w1, b1, w2, b2, *, block_b=32768):
    """Core entry point. xt: (D, B) batch-on-lanes; w1: (D, 32); b1: (32,);
    w2: (32, 1); b2: (1,). Returns (B, 1) probabilities (f32)."""
    D, B = xt.shape
    H = w1.shape[1]

    # Lane-aligned batch tile: either the full batch (single grid step) or a
    # multiple of 128 lanes.  The large default amortizes the ~0.35 us
    # per-grid-step overhead; a (16, 32768) f32 tile is only 2 MiB of VMEM.
    if block_b >= B:
        block_b = B
    else:
        block_b = max(128, (block_b // 128) * 128)
        if block_b >= B:
            block_b = B
    grid = (pl.cdiv(B, block_b),)

    w1t = jnp.asarray(w1, jnp.float32).T.reshape(H, D)     # (32, D) MXU LHS
    b1_col = jnp.asarray(b1, jnp.float32).reshape(H, 1)
    w2_col = jnp.asarray(w2, jnp.float32).reshape(H, 1)
    b2_11 = jnp.asarray(b2, jnp.float32).reshape(1, 1)

    out = pl.pallas_call(
        mlp_kernel,
        out_shape=jax.ShapeDtypeStruct((1, B), jnp.float32),
        grid_spec=pltpu.PrefetchScalarGridSpec(
            num_scalar_prefetch=0,
            grid=grid,
            in_specs=[
                # streamed, double-buffered per grid step (lane-dense x^T tile)
                pl.BlockSpec((D, block_b), lambda i: (0, i)),
                # weights & biases: constant index_map -> DMA once, stay resident
                pl.BlockSpec((H, D), lambda i: (0, 0)),
                pl.BlockSpec((H, 1), lambda i: (0, 0)),
                pl.BlockSpec((H, 1), lambda i: (0, 0)),
                # fc2 bias: scalar, lives in SMEM (no VMEM block / DMA bookkeeping)
                pl.BlockSpec(memory_space=pltpu.MemorySpace.SMEM),
            ],
            # lane-dense output slab: unmasked vst, one big writeback per step
            out_specs=pl.BlockSpec((1, block_b), lambda i: (0, i)),
        ),
        compiler_params=pltpu.CompilerParams(
            # shard the batch grid axis over v7x's 2 TensorCores (no-op on 1-TC chips)
            dimension_semantics=("parallel",),
            # lane-dense tiles need < 8 MiB even at block_b=32768, so a single
            # 32 MiB limit is safe and non-binding on v5e/v6e/v7x.
            vmem_limit_bytes=32 * 1024 * 1024,
        ),
    )(xt, w1t, b1_col, w2_col, b2_11)
    return out.reshape(B, 1)


def shallow_logistic_forward(x, w1, b1, w2, b2, *, block_b=32768):
    """Convenience wrapper matching the PyTorch interface. x: (B, D) -> (B, 1).
    The transpose to batch-on-lanes happens once outside the kernel; callers
    that can store x already transposed should use shallow_logistic_forward_xt."""
    return shallow_logistic_forward_xt(x.T, w1, b1, w2, b2, block_b=block_b)


def init_params(key, in_features, hidden=32, out_features=1):
    """nn.Linear-style U(-1/sqrt(fan_in), 1/sqrt(fan_in)) init.
    fc1 weight returned as (in, out); fc2 weight as (hidden, out)."""
    k1, k2, k3, k4 = jax.random.split(key, 4)
    bound1 = 1.0 / jnp.sqrt(in_features)
    w1 = jax.random.uniform(k1, (in_features, hidden), jnp.float32, -bound1, bound1)
    b1 = jax.random.uniform(k2, (hidden,), jnp.float32, -bound1, bound1)
    bound2 = 1.0 / jnp.sqrt(hidden)
    w2 = jax.random.uniform(k3, (hidden, out_features), jnp.float32, -bound2, bound2)
    b2 = jax.random.uniform(k4, (out_features,), jnp.float32, -bound2, bound2)
    return w1, b1, w2, b2


def _reference(x, w1, b1, w2, b2):
    h = jnp.maximum(x @ w1 + b1, 0.0)
    return jax.nn.sigmoid(h @ w2 + b2)


if __name__ == "__main__":
    key = jax.random.PRNGKey(0)
    k_x1, k_x2, k_x3, k_p = jax.random.split(key, 4)

    D = 16  # X_train_tensor.shape[1]
    w1, b1, w2, b2 = init_params(k_p, D)

    # Case 1: multi-step grid with lane-aligned tiles (4 steps of 128 lanes).
    B1 = 512
    x1 = jax.random.normal(k_x1, (B1, D), jnp.float32)
    out1 = jax.block_until_ready(shallow_logistic_forward(x1, w1, b1, w2, b2, block_b=128))
    ref1 = _reference(x1, w1, b1, w2, b2)
    assert out1.shape == (B1, 1)
    assert jnp.allclose(out1, ref1, atol=1e-5, rtol=1e-5)

    # Case 2: tiny batch -> the (huge) default tile clamps to the full array.
    B2 = 8
    x2 = jax.random.normal(k_x2, (B2, D), jnp.float32)
    out2 = jax.block_until_ready(shallow_logistic_forward(x2, w1, b1, w2, b2))
    ref2 = _reference(x2, w1, b1, w2, b2)
    assert out2.shape == (B2, 1)
    assert jnp.allclose(out2, ref2, atol=1e-5, rtol=1e-5)

    # Case 3: ragged last tile (B % block_b != 0); padded lanes are computed
    # but never written back, so results stay exact.
    B3 = 300
    x3 = jax.random.normal(k_x3, (B3, D), jnp.float32)
    out3 = jax.block_until_ready(shallow_logistic_forward(x3, w1, b1, w2, b2, block_b=128))
    ref3 = _reference(x3, w1, b1, w2, b2)
    assert out3.shape == (B3, 1)
    assert jnp.allclose(out3, ref3, atol=1e-5, rtol=1e-5)

    # Case 4: bf16-streamed activations (halves the dominant HBM read); the
    # kernel keeps f32 accumulation so accuracy is preserved.
    xb = x1.astype(jnp.bfloat16)
    outb = jax.block_until_ready(shallow_logistic_forward(xb, w1, b1, w2, b2, block_b=128))
    refb = _reference(xb.astype(jnp.float32), w1, b1, w2, b2)
    assert outb.shape == (B1, 1)
    assert jnp.allclose(outb, refb, atol=2e-2, rtol=2e-2)

    print("KERNEL_OK")
</pallas_src>

<mosaic_0001>
module attributes {stable_mosaic.version = 11 : i64} {
  func.func @mlp_kernel(%arg0: i32, %arg1: memref<16x128xf32, #tpu.memory_space<vmem>>, %arg2: memref<32x16xf32, #tpu.memory_space<vmem>>, %arg3: memref<32x1xf32, #tpu.memory_space<vmem>>, %arg4: memref<32x1xf32, #tpu.memory_space<vmem>>, %arg5: memref<1x1xf32, #tpu.memory_space<smem>>, %arg6: memref<1x128xf32, #tpu.memory_space<vmem>>) attributes {dimension_semantics = [#tpu.dimension_semantics<parallel>], iteration_bounds = array<i64: 4>, scalar_prefetch = 0 : i64, scratch_operands = 0 : i64, tpu.core_type = #tpu.core_type<tc>, window_params = [{transform_indices = @transform_0, window_bounds = array<i64: 16, 128>}, {pipeline_mode = #tpu.pipeline_mode<synchronous>, transform_indices = @transform_1, window_bounds = array<i64: 32, 16>}, {pipeline_mode = #tpu.pipeline_mode<synchronous>, transform_indices = @transform_2, window_bounds = array<i64: 32, 1>}, {pipeline_mode = #tpu.pipeline_mode<synchronous>, transform_indices = @transform_3, window_bounds = array<i64: 32, 1>}, {transform_indices = @transform_4, window_bounds = array<i64: 1, 1>}, {transform_indices = @transform_5, window_bounds = array<i64: 1, 128>}]} {
    %c0 = arith.constant 0 : index
    %c0_0 = arith.constant 0 : index
    %0 = vector.load %arg1[%c0, %c0_0] : memref<16x128xf32, #tpu.memory_space<vmem>>, vector<16x128xf32>
    %c0_1 = arith.constant 0 : index
    %c0_2 = arith.constant 0 : index
    %1 = vector.load %arg2[%c0_1, %c0_2] : memref<32x16xf32, #tpu.memory_space<vmem>>, vector<32x16xf32>
    %cst = arith.constant dense<0.000000e+00> : vector<32x128xf32>
    %2 = tpu.matmul %1, %0, %cst {dimension_numbers = #tpu.dot_dimension_numbers<[1], [0], [0], [1], [0, 0, 1, 1], [], []>} : vector<32x16xf32>, vector<16x128xf32>, vector<32x128xf32> -> vector<32x128xf32>
    %c0_3 = arith.constant 0 : index
    %c0_4 = arith.constant 0 : index
    %3 = vector.load %arg3[%c0_3, %c0_4] : memref<32x1xf32, #tpu.memory_space<vmem>>, vector<32x1xf32>
    %4 = vector.broadcast %3 : vector<32x1xf32> to vector<32x128xf32>
    %5 = arith.addf %2, %4 : vector<32x128xf32>
    %cst_5 = arith.constant 0.000000e+00 : f32
    %6 = vector.broadcast %cst_5 : f32 to vector<32x128xf32>
    %7 = arith.maximumf %5, %6 : vector<32x128xf32>
    %c0_6 = arith.constant 0 : index
    %c0_7 = arith.constant 0 : index
    %8 = vector.load %arg4[%c0_6, %c0_7] : memref<32x1xf32, #tpu.memory_space<vmem>>, vector<32x1xf32>
    %9 = vector.broadcast %8 : vector<32x1xf32> to vector<32x128xf32>
    %10 = arith.mulf %7, %9 : vector<32x128xf32>
    %cst_8 = arith.constant dense<0.000000e+00> : vector<128xf32>
    %11 = vector.multi_reduction <add>, %10, %cst_8 [0] : vector<32x128xf32> to vector<128xf32>
    %12 = vector.shape_cast %11 : vector<128xf32> to vector<1x128xf32>
    %c0_9 = arith.constant 0 : index
    %c0_10 = arith.constant 0 : index
    %13 = memref.load %arg5[%c0_9, %c0_10] : memref<1x1xf32, #tpu.memory_space<smem>>
    %14 = vector.broadcast %13 : f32 to vector<1x128xf32>
    %15 = arith.addf %12, %14 : vector<1x128xf32>
    %16 = arith.negf %15 : vector<1x128xf32>
    %17 = math.exp %16 : vector<1x128xf32>
    %cst_11 = arith.constant 1.000000e+00 : f32
    %18 = vector.broadcast %cst_11 : f32 to vector<1x128xf32>
    %19 = arith.addf %18, %17 : vector<1x128xf32>
    %20 = arith.divf %18, %19 : vector<1x128xf32>
    %c0_12 = arith.constant 0 : index
    %c0_13 = arith.constant 0 : index
    %21 = vector.load %arg6[%c0_12, %c0_13] : memref<1x128xf32, #tpu.memory_space<vmem>>, vector<1x128xf32>
    tpu.vector_store %arg6[%c0_12, %c0_13], %20 {strides = array<i32>} : memref<1x128xf32, #tpu.memory_space<vmem>>, vector<1x128xf32>,
    return
  }
  func.func @transform_0(%arg0: i32) -> (i32, i32) {
    %c0_i32 = arith.constant 0 : i32
    %c0_i32_0 = arith.constant 0 : i32
    return %c0_i32, %arg0 : i32, i32
  }
  func.func @transform_1(%arg0: i32) -> (i32, i32) {
    %c0_i32 = arith.constant 0 : i32
    %c0_i32_0 = arith.constant 0 : i32
    %c0_i32_1 = arith.constant 0 : i32
    return %c0_i32, %c0_i32_0 : i32, i32
  }
  func.func @transform_2(%arg0: i32) -> (i32, i32) {
    %c0_i32 = arith.constant 0 : i32
    %c0_i32_0 = arith.constant 0 : i32
    %c0_i32_1 = arith.constant 0 : i32
    return %c0_i32, %c0_i32_0 : i32, i32
  }
  func.func @transform_3(%arg0: i32) -> (i32, i32) {
    %c0_i32 = arith.constant 0 : i32
    %c0_i32_0 = arith.constant 0 : i32
    %c0_i32_1 = arith.constant 0 : i32
    return %c0_i32, %c0_i32_0 : i32, i32
  }
  func.func @transform_4(%arg0: i32) -> (i32, i32) {
    %c0_i32 = arith.constant 0 : i32
    %c0_i32_0 = arith.constant 0 : i32
    %c0_i32_1 = arith.constant 0 : i32
    return %c0_i32, %c0_i32_0 : i32, i32
  }
  func.func @transform_5(%arg0: i32) -> (i32, i32) {
    %c0_i32 = arith.constant 0 : i32
    %c0_i32_0 = arith.constant 0 : i32
    return %c0_i32, %arg0 : i32, i32
  }
}

</mosaic_0001>

<bundles_post_ra>
// kernel: tpu_custom_call.1
= control target key start
LH: loop header
LB: loop body
LE: loop exit
PB: predicated region body
PF: predicated region fallthrough
CT: control target
= control target key end

     0   :  { %s765_s0 = inlined_call_operand.vmem [shape: f32[16,512], index: 0, kind: input, shape index: {}]   ;;  %s766_s1 = inlined_call_operand.vmem [shape: f32[32,16], index: 1, kind: input, shape index: {}]   ;;  %s767_s2 = inlined_call_operand.vmem [shape: f32[32,1], index: 2, kind: input, shape index: {}]   ;;  %s768_s3 = inlined_call_operand.vmem [shape: f32[32,1], index: 3, kind: input, shape index: {}]   ;;  %s769_s4 = inlined_call_operand.<no memory space> [shape: f32[1,1], index: 4, kind: input, shape index: {}]   ;;  %s770_s5 = inlined_call_operand.hbm [shape: f32[1,512], index: 5, kind: output, shape index: {}]  }
   0x1   :  { %10 = sst [smem:[#allocation2]] %s769_s4 }
   0x2   :  { %11 = vsyncpa [#allocation5], 0 }
   0x3   :  { %13 = vsyncpa [#allocation5 + $0x1], 0  ;;  %s637_s20 = smov 0   ;;  %s639_s21 = smov 0  }
   0x4   :  { %s641_s22 = smov 0   ;;  %s643_s23 = smov 0  }
   0x5 LB: > { %s471_s4 = sadd.s32 4294967295, %s601_s23   ;;  %s472_s24 = sadd.s32 4294967294, %s601_s23   ;;  %s601_s23 = sphi %s643_s23, %s776_s23   ;;  %s597_s22 = sphi %s641_s22, %s775_s22   ;;  %s593_s21 = sphi %s639_s21, %s774_s21   ;;  %s589_s20 = sphi %s637_s20, %s773_s20  }
   0x6   : > { %s660_s25 = sadd.s32 1, %s601_s23   ;;  %s26_s26 = sadd.s32 1, %s597_s22 }
   0x7   : > { %s23_s27 = ssub.s32 %s601_s23, %s660_s25  ;;  %p33_p0 = scmp.ne.s32.totalorder %s597_s22, %s593_s21 }
   0x8   : > { %p24_p1 = scmp.eq.s32.totalorder %s23_s27, 0  ;;  %p34_p2 = scmp.eq.s32.totalorder %s601_s23, 0 }
   0x9   : > { %p147_p3 = scmp.eq.s32.totalorder %s471_s4, 3  ;;  %p152_p4 = scmp.ne.s32.totalorder %s593_s21, %s589_s20 }
   0xa   : > { %s673_s28 = scalar_select %p24_p1, %s597_s22, %s26_s26  }
   0xb   : > { %p35_p5 = por %p34_p2, %p33_p0  ;;  %p675_p6 = por %p147_p3, %p33_p0 }
   0xc   : > { %p153_p7 = scmp.eq.s32.totalorder %s472_s24, 3  ;;  %p474_p9 = scmp.ge.s32.totalorder %s601_s23, 4 }
   0xe   : > { %p679_p8 = por %p153_p7, %p152_p4  ;;  %181 = sbr.rel (%p474_p9) target bundleno = 25 (0x19), region = 32 }
  0x13   : > { %184 = sbr.rel (!%p35_p5) target bundleno = 25 (0x19), region = 36  ;;  %s186_s6 = sand.u32 (%p35_p5), 1, %s597_s22  }
  0x14   : > { %s476_s7 = sshll.u32 (%p35_p5), %s601_s23, 3  ;;  %s475_s8 = sshll.u32 (%p35_p5), %s186_s6, 4 }
  0x15   : > { %s190_s11 = scalar_lea.vmem (%p35_p5), %s765_s0, %s476_s7  ;;  %s188_s12 = scalar_lea.vmem (%p35_p5), [#allocation3], %s475_s8 }
  0x16   : > { %v221_v0 = vld [vmem:[%s190_s11] sm:$0xff] (%p35_p5) }
  0x17   : > { %v223_v1 = vld [vmem:[%s190_s11 + $0x20] sm:$0xff] (%p35_p5)  ;;  %222 = vst [vmem:[%s188_s12] sm:$0xff] (%p35_p5), %v221_v0 }
  0x18   : > { %224 = vst [vmem:[%s188_s12 + $0x8] sm:$0xff] %v223_v1 }
  0x19 PF: > { %p477_p10 = scmp.ge.s32.totalorder %s601_s23, 1  ;;  %p229_p11 = scmp.lt.s32.totalorder %s601_s23, 5 }
  0x1b   : > { %p230_p12 = pnand %p477_p10, %p229_p11 }
  0x1c   : > { %s698_s17 = sand.u32 (!%p230_p12), 1, %s593_s21   ;;  %s375_s7 = sld [smem:[#allocation2]] (!%p230_p12) }
  0x1d   : > { %233 = sbr.rel (%p230_p12) target bundleno = 229 (0xe5), region = 74  ;;  %s478_s18 = sshll.u32 (!%p230_p12), %s698_s17, 4 }
  0x1e   : > { %s238_s19 = scalar_lea.vmem (!%p230_p12), [#allocation3], %s478_s18  ;;  %s407_s10 = scalar_lea.hbm (!%p230_p12), %s770_s5, %s471_s4 }
  0x1f   : > { %s261_s11 = scalar_lea.vmem (!%p230_p12), [#allocation4], %s698_s17  ;;  %s411_s13 = sshll.u32 (!%p230_p12), %s407_s10, 4  ;;  %s412_s13 = int_to_ptr.hbm [resolvable:$true] %s411_s13 }
  0x20   : > { %s409_s12 = sshll.u32 (!%p230_p12), %s261_s11, 4  ;;  %s399_s4 = scalar_lea.sflag (!%p230_p12), [#allocation5], %s698_s17  ;;  %s410_s12 = int_to_ptr.vmem [resolvable:$true] %s409_s12 }
  0x21   : > { %s553_s14 = sshra.s32 (!%p230_p12), %s412_s13, 4  ;;  %s554_s14 = int_to_ptr.hbm [resolvable:$true] %s553_s14 }
  0x22   : > { %v270_v2 = vld [vmem:[%s767_s2 + $0x10] sm:$0xff]  ;;  %v268_v3 = vld [vmem:[%s767_s2] sm:$0xff]  ;;  %v603_v4 = vmov 0   ;;  %v263_v5 = vld [vmem:[%s238_s19 + $0x8] sm:$0xff]  ;;  %vm292_vm0 = vcmask 130048   ;;  %v376_v49 = vstv %s375_s7  ;;  %s555_s15 = scalar_lea.hbm %s554_s14, 1  ;;  %p560_p2 = scmp.lt.s32.totalorder %s554_s14, %s770_s5 }
  0x23   : > { %533 = vset.pattern.permute.xlu1 %v603_v4  ;;  %532 = vset.pattern.permute.xlu0 %v603_v4  ;;  %v262_v6 = vld [vmem:[%s238_s19] sm:$0xff]  ;;  %v265_v8 = vld [vmem:[%s766_s1 + $0x8] sm:$0xff]  ;;  %v267_v10 = vld [vmem:[%s766_s1 + $0x18] sm:$0xff]  ;;  %p556_p13 = scmp.ne.s32.totalorder %s554_s14, %s555_s15  ;;  %s559_s19 = scalar_lea.hbm %s770_s5, 4 }
  0x24   : > { %284 = vperm.xlu1 %533, %v270_v2   ;;  %274 = vperm.xlu0 %532, %v268_v3   ;;  %v264_v7 = vld [vmem:[%s766_s1] sm:$0xff]  ;;  %v266_v9 = vld [vmem:[%s766_s1 + $0x10] sm:$0xff]  ;;  %v271_v11 = vld [vmem:[%s767_s2 + $0x18] sm:$0xff]  ;;  %p561_p3 = scmp.lt.s32.totalorder %s559_s19, %s555_s15 }
  0x25   : > { %534 = vset.pattern.permute.xlu2 %v603_v4  ;;  %319 = vmatpush.msra.mxu0 %v263_v5  ;;  %v269_v12 = vld [vmem:[%s767_s2 + $0x8] sm:$0xff]  ;;  %v338_v13 = vld [vmem:[%s768_s3] sm:$0xff]  ;;  %v341_v14 = vld [vmem:[%s768_s3 + $0x18] sm:$0xff]  ;;  %p557_p0 = pnand %p556_p13, %p675_p6 }
  0x26   : > { %486 = vmatpush.msra.mxu1 %v263_v5  ;;  %487 = vmatpush.msra.mxu2 %v263_v5  ;;  %v340_v15 = vld [vmem:[%s768_s3 + $0x10] sm:$0xff]  ;;  %v339_v16 = vld [vmem:[%s768_s3 + $0x8] sm:$0xff]  ;;  %p562_p4 = por %p561_p3, %p560_p2 }
  0x27   : > { %488 = vmatpush.msra.mxu3 %v263_v5  ;;  %320 = vmatpush.msra.mxu0 %v262_v6  ;;  %p558_p1 = pneg %p557_p0 }
  0x28   : > { %489 = vmatpush.msra.mxu1 %v262_v6  ;;  %490 = vmatpush.msra.mxu2 %v262_v6 }
  0x29   : > { %491 = vmatpush.msra.mxu3 %v262_v6  ;;  %479 = vmatmul.msk.f32.vlgmr.msra.gmra.mxu0 %vm292_vm0, %v264_v7  ;;  %p563_p5 = pnand %p562_p4, %p558_p1 }
  0x2a   : > { %480 = vmatmul.msk.f32.vlgmr.msra.gmra.mxu1 %vm292_vm0, %v265_v8  ;;  %481 = vmatmul.msk.f32.vlgmr.msra.gmra.mxu2 %vm292_vm0, %v266_v9 }
  0x2b   : > { %482 = vmatmul.msk.f32.vlgmr.msra.gmra.mxu3 %vm292_vm0, %v267_v10  ;;  %344 = vperm.xlu2 %534, %v338_v13  }
  0x2c   : > { %289 = vperm.xlu1 %533, %v271_v11   ;;  %279 = vperm.xlu0 %532, %v269_v12  }
  0x33   : > { %349 = vperm.xlu2 %534, %v339_v16  }
  0x34   : > { %359 = vperm.xlu1 %533, %v341_v14   ;;  %354 = vperm.xlu0 %532, %v340_v15  }
  0x85   : > { %v345_v19 = vpop.permute.xlu2 %344 }
  0x8d   : > { %v350_v28 = vpop.permute.xlu2 %349 }
  0x96   : > { %v275_v17 = vpop.permute.xlu0 %274  ;;  %v285_v18 = vpop.permute.xlu1 %284 }
  0x9e   : > { %v280_v20 = vpop.permute.xlu0 %279  ;;  %v290_v25 = vpop.permute.xlu1 %289 }
  0xa6   : > { %v322_v21 = vpop.f32.mrf.mxu0  ;;  %v355_v37 = vpop.permute.xlu0 %354 }
  0xa7   : > { %v325_v22 = vpop.f32.mrf.mxu1  ;;  %v323_v23 = vadd.f32 %v322_v21, %v275_v17  ;;  %v360_v40 = vpop.permute.xlu1 %359 }
  0xa8   : > { %v326_v24 = vadd.f32 %v325_v22, %v280_v20 }
  0xa9   : > { %v334_v26 = vmax.f32 %v323_v23, 0.0 }
  0xaa   : > { %v335_v27 = vmax.f32 %v326_v24, 0.0 }
  0xab   : > { %v362_v31 = vmul.f32 %v345_v19, %v334_v26 }
  0xac   : > { %v363_v32 = vmul.f32 %v350_v28, %v335_v27 }
  0xad   : > { %v328_v29 = vpop.f32.mrf.mxu2 }
  0xae   : > { %v331_v30 = vpop.f32.mrf.mxu3  ;;  %v329_v33 = vadd.f32 %v328_v29, %v285_v18  ;;  %v366_v38 = vadd.f32 %v363_v32, %v362_v31 }
  0xaf   : > { %v332_v34 = vadd.f32 %v331_v30, %v290_v25 }
  0xb0   : > { %v336_v35 = vmax.f32 %v329_v33, 0.0 }
  0xb1   : > { %v337_v36 = vmax.f32 %v332_v34, 0.0 }
  0xb2   : > { %v364_v39 = vmul.f32 %v355_v37, %v336_v35 }
  0xb3   : > { %v365_v42 = vmul.f32 %v360_v40, %v337_v36 }
  0xb4   : > { %v367_v41 = vadd.f32 %v366_v38, %v364_v39 }
  0xb6   : > { %v368_v43 = vadd.f32 %v367_v41, %v365_v42 }
  0xb8   : > { %v369_v44 = vrot.slane %v368_v43, 4 }
  0xba   : > { %v370_v45 = vadd.f32 %v369_v44, %v368_v43 }
  0xbc   : > { %v371_v46 = vrot.slane %v370_v45, 2 }
  0xbe   : > { %v372_v47 = vadd.f32 %v371_v46, %v370_v45 }
  0xc0   : > { %v373_v48 = vrot.slane %v372_v47, 1 }
  0xc2   : > { %v374_v50 = vadd.f32 %v373_v48, %v372_v47 }
  0xc4   : > { %v377_v51 = vadd.f32 %v376_v49, %v374_v50 }
  0xc6   : > { %v483_v52 = vmul.f32 -1.442695, %v377_v51 }
  0xc8   : > { %535 = vpow2.f32 %v483_v52 }
  0xce   : > { %v536_v53 = vpop.eup %535 }
  0xcf   : > { %v381_v54 = vadd.f32 1.0, %v536_v53 }
  0xd1   : > { %537 = vrcp.f32 %v381_v54  ;;  %v393_v58 = vand.u32 2147483648, %v381_v54  ;;  %v391_v60 = vand.u32 2147483647, %v381_v54  ;;  %vm387_vm2 = vweird.f32 %v381_v54 }
  0xd3   : > { %v394_v62 = vor.u32 1.1754944e-38, %v393_v58  ;;  %vm392_vm4 = vcmp.eq.f32.partialorder %v391_v60, 8.507059e+37 }
  0xd7   : > { %v538_v55 = vpop.eup %537 }
  0xd8   : > { %v383_v56 = vmul.f32 %v538_v55, %v381_v54  ;;  %vm388_vm1 = vweird.f32 %v538_v55 }
  0xd9   : > { %vm389_vm3 = vmor %vm387_vm2, %vm388_vm1 }
  0xda   : > { %v384_v57 = vsub.f32 1.0, %v383_v56 }
  0xdc   : > { %v385_v59 = vmul.f32 %v538_v55, %v384_v57 }
  0xde   : > { %v386_v61 = vadd.f32 %v538_v55, %v385_v59 }
  0xe0   : > { %v390_v63 = vsel %vm389_vm3, %v538_v55, %v386_v61 }
  0xe1   : > { %v395_v0 = vsel %vm392_vm4, %v394_v62, %v390_v63 }
  0xe2   : > { %397 = vst [vmem:[%s261_s11] sm:$0x1] %v395_v0 }
  0xe3   : > { %566 = shalt.err (!%p563_p5)
}
  0xe4   : > { %492 = dma.vmem_to_hbm [thread:$0]  (%p675_p6), %s410_s12, 16, %s412_s13, %s399_s4  }
  0xe5 PF: > { %p498_p7 = scmp.ge.s32.totalorder %s601_s23, 2  ;;  %s423_s17 = sand.u32 1, %s589_s20  }
  0xe6   : > { %s424_s27 = scalar_lea.sflag [#allocation5], %s423_s17 }
  0xe7   : > { %p495_p9 = pnand %p498_p7, %p679_p8 }
  0xe9   : > { %p496_p10 = pneg %p495_p9 }
  0xeb   : > { %584 = dma.done.wait (%p496_p10), %s424_s27, 16  }
  0xec   : > { %586 = vsyncadd (%p496_p10), %s424_s27, 4294967280  ;;  %p16_p11 = scmp.ge.s32.totalorder %s660_s25, 6   ;;  %s773_s20 = smov %s593_s21 }
  0xed   : > { %s774_s21 = smov %s597_s22  ;;  %s775_s22 = smov %s673_s28 }
  0xee   : > { %s776_s23 = smov %s660_s25  ;;  %18 = sbr.rel (!%p16_p11) target bundleno = 5 (0x5), region = 118 }
  0xf3   :  { %429 = vsyncpa [#allocation5], 1 }
  0xf4   :  { %431 = vsyncpa [#allocation5 + $0x1], 1 }

</bundles_post_ra>
